<compile_context>
chip_gen: v7x
topology: tpu7x:2x2x1
jax: 0.10.0
libtpu: 0.0.40
codegen_flags: <defaults>
</compile_context>

<pallas_src>
import jax
import jax.numpy as jnp
from jax.experimental import pallas as pl
from jax.experimental.pallas import tpu as pltpu


def _fused_convblock_kernel(x_ref, w1_ref, b1_ref, w2_ref, b2_ref, o_ref,
                            xp1, xp2):
    # x_ref : (1, H, W*Cin)      bf16 width-flattened NHWC input tile
    # w1_ref: (3, W*Cin, W*C1)   bf16 banded weights, one slab per kernel row
    # b1_ref: (1, W*C1)          f32 bias tiled across W
    # w2_ref: (3, W*C1, W*C2)    bf16
    # b2_ref: (1, W*C2)          f32
    # o_ref : (1, H, W*C2)       f32 lane-dense output tile
    # xp1   : VMEM (H+4, W*Cin)  bf16 row-padded layer-1 input, interior @ rows 2..H+1
    # xp2   : VMEM (H+4, W*C1)   bf16 row-padded layer-2 input
    H = o_ref.shape[1]

    # Zero only the two halo rows (rows 1 and H+2); interior rows are fully
    # overwritten below.  Unconditional (see header for why not pl.when).
    xp1[1:2, :] = jnp.zeros((1, xp1.shape[1]), xp1.dtype)
    xp1[H + 2:H + 3, :] = jnp.zeros((1, xp1.shape[1]), xp1.dtype)
    xp2[1:2, :] = jnp.zeros((1, xp2.shape[1]), xp2.dtype)
    xp2[H + 2:H + 3, :] = jnp.zeros((1, xp2.shape[1]), xp2.dtype)

    # ---- conv1 + ReLU: 3 banded MXU matmuls, K = W*Cin, N = W*C1 ----
    x0 = x_ref[0]                           # center-tap operand, straight from input
    xp1[2:H + 2, :] = x0                    # interior used by the +/-1 row taps
    acc1 = jnp.dot(xp1[1:H + 1, :], w1_ref[0], preferred_element_type=jnp.float32)
    acc1 = acc1 + jnp.dot(x0, w1_ref[1], preferred_element_type=jnp.float32)
    acc1 = acc1 + jnp.dot(xp1[3:H + 3, :], w1_ref[2], preferred_element_type=jnp.float32)
    act1 = jnp.maximum(acc1 + b1_ref[...], 0.0)          # f32 bias + ReLU
    act1_b = act1.astype(xp2.dtype)                       # single bf16 cast

    # ---- conv2 + ReLU (intermediate never leaves VMEM) ----
    xp2[2:H + 2, :] = act1_b
    acc2 = jnp.dot(xp2[1:H + 1, :], w2_ref[0], preferred_element_type=jnp.float32)
    acc2 = acc2 + jnp.dot(act1_b, w2_ref[1], preferred_element_type=jnp.float32)
    acc2 = acc2 + jnp.dot(xp2[3:H + 3, :], w2_ref[2], preferred_element_type=jnp.float32)
    out = jnp.maximum(acc2 + b2_ref[...], 0.0)
    o_ref[0] = out.astype(o_ref.dtype)                    # direct lane-dense store


def _banded_weights(w_hwio, W):
    """Expand a (3,3,Cin,Cout) conv kernel into banded matmul weights.

    Returns B of shape (3, W*Cin, W*Cout) such that, with the row-padded
    input flattened as x[h, w*Cin + c], the conv contribution of kernel row
    dy is x_row(dy) @ B[dy].  Out-of-range width taps (the zero spatial
    padding along W) are dropped from the band (their contribution is zero).
    """
    kh, kw, Cin, Cout = w_hwio.shape
    w_idx = jnp.arange(W)                      # source (unpadded) column
    wp_idx = jnp.arange(W)                     # output column
    dx = w_idx[:, None] - wp_idx[None, :] + 1  # (W, W) tap index
    valid = (dx >= 0) & (dx < kw)
    dx_c = jnp.clip(dx, 0, kw - 1)
    sel = w_hwio[:, dx_c]                      # (3, W, W, Cin, Cout) = [t,w,w',c,co]
    sel = jnp.where(valid[None, :, :, None, None], sel, 0.0)
    band = jnp.transpose(sel, (0, 1, 3, 2, 4))  # (t, w, c, w', co)
    return band.reshape(kh, W * Cin, W * Cout)


def prepare_conv_block_params(w1, b1, w2, b2, W, compute_dtype=jnp.bfloat16):
    """One-time parameter prep, hoisted out of the per-call forward path."""
    w1b = _banded_weights(w1, W).astype(compute_dtype)     # (3, W*Cin, W*C1)
    w2b = _banded_weights(w2, W).astype(compute_dtype)     # (3, W*C1, W*C2)
    b1t = jnp.tile(b1, W)[None, :].astype(jnp.float32)     # (1, W*C1)
    b2t = jnp.tile(b2, W)[None, :].astype(jnp.float32)     # (1, W*C2)
    return w1b, b1t, w2b, b2t


def init_conv_params(key, in_channels, out_channels):
    """Deterministic init mimicking nn.Conv2d defaults (kaiming-uniform-ish)."""
    kw_, kb = jax.random.split(key)
    fan_in = in_channels * 3 * 3
    bound = 1.0 / jnp.sqrt(float(fan_in))
    # HWIO layout: (kh, kw, Cin, Cout)
    w = jax.random.uniform(
        kw_, (3, 3, in_channels, out_channels), jnp.float32, -bound, bound
    )
    b = jax.random.uniform(kb, (out_channels,), jnp.float32, -bound, bound)
    return w, b


@jax.jit
def conv_block_forward(x_nchw, w1b, b1t, w2b, b2t):
    """ConvBlock.forward: relu(conv2(relu(conv1(x)))), NCHW in / NCHW out."""
    N, Cin, H, W = x_nchw.shape
    C1 = b1t.shape[-1] // W
    C2 = b2t.shape[-1] // W
    assert w1b.shape == (3, W * Cin, W * C1)
    assert w2b.shape == (3, W * C1, W * C2)

    # Size gate: banded weights are O(W^2*Cin*Cout) and double-buffered.
    band_bytes = 2 * (w1b.size * w1b.dtype.itemsize + w2b.size * w2b.dtype.itemsize)
    if band_bytes > 32 * 1024 * 1024:
        # TODO(synk): H-band grid with halo + per-tap matmuls for large W.
        raise NotImplementedError("banded ConvBlock kernel is gated to small spatial sizes")

    # Layout plumbing (tiny XLA ops): NCHW -> NHWC -> width-flattened, bf16.
    # TODO(synk): keep the surrounding model NHWC/bf16 end-to-end to drop these.
    x_flat = jnp.transpose(x_nchw, (0, 2, 3, 1)).reshape(N, H, W * Cin)
    x_flat = x_flat.astype(w1b.dtype)

    out_flat = pl.pallas_call(
        _fused_convblock_kernel,
        out_shape=jax.ShapeDtypeStruct((N, H, W * C2), jnp.float32),
        grid_spec=pltpu.PrefetchScalarGridSpec(
            num_scalar_prefetch=0,
            grid=(N,),
            in_specs=[
                pl.BlockSpec((1, H, W * Cin), lambda n: (n, 0, 0)),
                pl.BlockSpec((3, W * Cin, W * C1), lambda n: (0, 0, 0)),
                pl.BlockSpec((1, W * C1), lambda n: (0, 0)),
                pl.BlockSpec((3, W * C1, W * C2), lambda n: (0, 0, 0)),
                pl.BlockSpec((1, W * C2), lambda n: (0, 0)),
            ],
            out_specs=pl.BlockSpec((1, H, W * C2), lambda n: (n, 0, 0)),
            scratch_shapes=[
                pltpu.VMEM((H + 4, W * Cin), w1b.dtype),
                pltpu.VMEM((H + 4, W * C1), w2b.dtype),
            ],
        ),
        compiler_params=pltpu.CompilerParams(
            dimension_semantics=("parallel",),
        ),
    )(x_flat, w1b, b1t, w2b, b2t)

    out_nhwc = out_flat.reshape(N, H, W, C2)
    return jnp.transpose(out_nhwc, (0, 3, 1, 2)).astype(x_nchw.dtype)  # -> NCHW


def _reference_conv_block(x_nchw, w1, b1, w2, b2):
    """Pure-JAX reference (lax conv, f32) for correctness checking."""
    def conv_relu(x, w_hwio, b):
        y = jax.lax.conv_general_dilated(
            x, w_hwio,
            window_strides=(1, 1),
            padding=((1, 1), (1, 1)),
            dimension_numbers=("NCHW", "HWIO", "NCHW"),
        )
        y = y + b[None, :, None, None]
        return jnp.maximum(y, 0.0)
    return conv_relu(conv_relu(x_nchw, w1, b1), w2, b2)


if __name__ == "__main__":
    key = jax.random.PRNGKey(0)
    k_x, k_c1, k_c2 = jax.random.split(key, 3)

    batch, in_channels, out_channels, spatial = 2, 4, 8, 16
    x = jax.random.normal(
        k_x, (batch, in_channels, spatial, spatial), jnp.float32
    )

    w1, b1 = init_conv_params(k_c1, in_channels, out_channels)
    w2, b2 = init_conv_params(k_c2, out_channels, out_channels)

    # Parameter prep (banding + bias tiling + bf16 cast) done once, not per call.
    params = prepare_conv_block_params(w1, b1, w2, b2, W=spatial)
    params = jax.block_until_ready(params)

    out = conv_block_forward(x, *params)
    out = jax.block_until_ready(out)

    ref = _reference_conv_block(x, w1, b1, w2, b2)
    assert out.shape == (batch, out_channels, spatial, spatial)
    # bf16 matmul operands (f32 accumulate) => looser tolerance vs f32 reference.
    assert jnp.allclose(out, ref, atol=5e-2, rtol=5e-2), "mismatch vs reference"

    print("KERNEL_OK")
</pallas_src>

<mosaic_0001>
module attributes {stable_mosaic.version = 11 : i64} {
  func.func @_fused_convblock_kernel(%arg0: i32, %arg1: memref<1x16x64xbf16, #tpu.memory_space<vmem>>, %arg2: memref<3x64x128xbf16, #tpu.memory_space<vmem>>, %arg3: memref<1x128xf32, #tpu.memory_space<vmem>>, %arg4: memref<3x128x128xbf16, #tpu.memory_space<vmem>>, %arg5: memref<1x128xf32, #tpu.memory_space<vmem>>, %arg6: memref<1x16x128xf32, #tpu.memory_space<vmem>>, %arg7: memref<20x64xbf16, #tpu.memory_space<vmem>>, %arg8: memref<20x128xbf16, #tpu.memory_space<vmem>>) attributes {dimension_semantics = [#tpu.dimension_semantics<parallel>], iteration_bounds = array<i64: 2>, scalar_prefetch = 0 : i64, scratch_operands = 2 : i64, tpu.core_type = #tpu.core_type<tc>, window_params = [{transform_indices = @transform_0, window_bounds = array<i64: 1, 16, 64>}, {pipeline_mode = #tpu.pipeline_mode<synchronous>, transform_indices = @transform_1, window_bounds = array<i64: 3, 64, 128>}, {pipeline_mode = #tpu.pipeline_mode<synchronous>, transform_indices = @transform_2, window_bounds = array<i64: 1, 128>}, {pipeline_mode = #tpu.pipeline_mode<synchronous>, transform_indices = @transform_3, window_bounds = array<i64: 3, 128, 128>}, {pipeline_mode = #tpu.pipeline_mode<synchronous>, transform_indices = @transform_4, window_bounds = array<i64: 1, 128>}, {transform_indices = @transform_5, window_bounds = array<i64: 1, 16, 128>}]} {
    %cst = arith.constant 0.000000e+00 : bf16
    %0 = vector.broadcast %cst : bf16 to vector<1x64xbf16>
    %c1 = arith.constant 1 : index
    %c0 = arith.constant 0 : index
    %1 = vector.load %arg7[%c1, %c0] : memref<20x64xbf16, #tpu.memory_space<vmem>>, vector<1x64xbf16>
    tpu.vector_store %arg7[%c1, %c0], %0 {strides = array<i32>} : memref<20x64xbf16, #tpu.memory_space<vmem>>, vector<1x64xbf16>,
    %cst_0 = arith.constant 0.000000e+00 : bf16
    %2 = vector.broadcast %cst_0 : bf16 to vector<1x64xbf16>
    %c18 = arith.constant 18 : index
    %c0_1 = arith.constant 0 : index
    %3 = vector.load %arg7[%c18, %c0_1] : memref<20x64xbf16, #tpu.memory_space<vmem>>, vector<1x64xbf16>
    tpu.vector_store %arg7[%c18, %c0_1], %2 {strides = array<i32>} : memref<20x64xbf16, #tpu.memory_space<vmem>>, vector<1x64xbf16>,
    %cst_2 = arith.constant 0.000000e+00 : bf16
    %4 = vector.broadcast %cst_2 : bf16 to vector<1x128xbf16>
    %c1_3 = arith.constant 1 : index
    %c0_4 = arith.constant 0 : index
    %5 = vector.load %arg8[%c1_3, %c0_4] : memref<20x128xbf16, #tpu.memory_space<vmem>>, vector<1x128xbf16>
    tpu.vector_store %arg8[%c1_3, %c0_4], %4 {strides = array<i32>} : memref<20x128xbf16, #tpu.memory_space<vmem>>, vector<1x128xbf16>,
    %cst_5 = arith.constant 0.000000e+00 : bf16
    %6 = vector.broadcast %cst_5 : bf16 to vector<1x128xbf16>
    %c18_6 = arith.constant 18 : index
    %c0_7 = arith.constant 0 : index
    %7 = vector.load %arg8[%c18_6, %c0_7] : memref<20x128xbf16, #tpu.memory_space<vmem>>, vector<1x128xbf16>
    tpu.vector_store %arg8[%c18_6, %c0_7], %6 {strides = array<i32>} : memref<20x128xbf16, #tpu.memory_space<vmem>>, vector<1x128xbf16>,
    %c0_8 = arith.constant 0 : index
    %c0_9 = arith.constant 0 : index
    %c0_10 = arith.constant 0 : index
    %8 = vector.load %arg1[%c0_8, %c0_9, %c0_10] : memref<1x16x64xbf16, #tpu.memory_space<vmem>>, vector<1x16x64xbf16>
    %9 = vector.shape_cast %8 : vector<1x16x64xbf16> to vector<16x64xbf16>
    %c2 = arith.constant 2 : index
    %c0_11 = arith.constant 0 : index
    %10 = vector.load %arg7[%c2, %c0_11] : memref<20x64xbf16, #tpu.memory_space<vmem>>, vector<16x64xbf16>
    tpu.vector_store %arg7[%c2, %c0_11], %9 {strides = array<i32>} : memref<20x64xbf16, #tpu.memory_space<vmem>>, vector<16x64xbf16>,
    %c1_12 = arith.constant 1 : index
    %c0_13 = arith.constant 0 : index
    %11 = vector.load %arg7[%c1_12, %c0_13] : memref<20x64xbf16, #tpu.memory_space<vmem>>, vector<16x64xbf16>
    %c0_14 = arith.constant 0 : index
    %c0_15 = arith.constant 0 : index
    %c0_16 = arith.constant 0 : index
    %12 = vector.load %arg2[%c0_14, %c0_15, %c0_16] : memref<3x64x128xbf16, #tpu.memory_space<vmem>>, vector<1x64x128xbf16>
    %13 = vector.shape_cast %12 : vector<1x64x128xbf16> to vector<64x128xbf16>
    %cst_17 = arith.constant dense<0.000000e+00> : vector<16x128xf32>
    %14 = tpu.matmul %11, %13, %cst_17 {dimension_numbers = #tpu.dot_dimension_numbers<[1], [0], [0], [1], [0, 0, 1, 1], [], []>} : vector<16x64xbf16>, vector<64x128xbf16>, vector<16x128xf32> -> vector<16x128xf32>
    %c1_18 = arith.constant 1 : index
    %c0_19 = arith.constant 0 : index
    %c0_20 = arith.constant 0 : index
    %15 = vector.load %arg2[%c1_18, %c0_19, %c0_20] : memref<3x64x128xbf16, #tpu.memory_space<vmem>>, vector<1x64x128xbf16>
    %16 = vector.shape_cast %15 : vector<1x64x128xbf16> to vector<64x128xbf16>
    %cst_21 = arith.constant dense<0.000000e+00> : vector<16x128xf32>
    %17 = tpu.matmul %9, %16, %cst_21 {dimension_numbers = #tpu.dot_dimension_numbers<[1], [0], [0], [1], [0, 0, 1, 1], [], []>} : vector<16x64xbf16>, vector<64x128xbf16>, vector<16x128xf32> -> vector<16x128xf32>
    %18 = arith.addf %14, %17 : vector<16x128xf32>
    %c3 = arith.constant 3 : index
    %c0_22 = arith.constant 0 : index
    %19 = vector.load %arg7[%c3, %c0_22] : memref<20x64xbf16, #tpu.memory_space<vmem>>, vector<16x64xbf16>
    %c2_23 = arith.constant 2 : index
    %c0_24 = arith.constant 0 : index
    %c0_25 = arith.constant 0 : index
    %20 = vector.load %arg2[%c2_23, %c0_24, %c0_25] : memref<3x64x128xbf16, #tpu.memory_space<vmem>>, vector<1x64x128xbf16>
    %21 = vector.shape_cast %20 : vector<1x64x128xbf16> to vector<64x128xbf16>
    %cst_26 = arith.constant dense<0.000000e+00> : vector<16x128xf32>
    %22 = tpu.matmul %19, %21, %cst_26 {dimension_numbers = #tpu.dot_dimension_numbers<[1], [0], [0], [1], [0, 0, 1, 1], [], []>} : vector<16x64xbf16>, vector<64x128xbf16>, vector<16x128xf32> -> vector<16x128xf32>
    %23 = arith.addf %18, %22 : vector<16x128xf32>
    %c0_27 = arith.constant 0 : index
    %c0_28 = arith.constant 0 : index
    %24 = vector.load %arg3[%c0_27, %c0_28] : memref<1x128xf32, #tpu.memory_space<vmem>>, vector<1x128xf32>
    %25 = vector.broadcast %24 : vector<1x128xf32> to vector<16x128xf32>
    %26 = arith.addf %23, %25 : vector<16x128xf32>
    %cst_29 = arith.constant 0.000000e+00 : f32
    %27 = vector.broadcast %cst_29 : f32 to vector<16x128xf32>
    %28 = arith.maximumf %26, %27 : vector<16x128xf32>
    %29 = arith.truncf %28 : vector<16x128xf32> to vector<16x128xbf16>
    %c2_30 = arith.constant 2 : index
    %c0_31 = arith.constant 0 : index
    %30 = vector.load %arg8[%c2_30, %c0_31] : memref<20x128xbf16, #tpu.memory_space<vmem>>, vector<16x128xbf16>
    tpu.vector_store %arg8[%c2_30, %c0_31], %29 {strides = array<i32>} : memref<20x128xbf16, #tpu.memory_space<vmem>>, vector<16x128xbf16>,
    %c1_32 = arith.constant 1 : index
    %c0_33 = arith.constant 0 : index
    %31 = vector.load %arg8[%c1_32, %c0_33] : memref<20x128xbf16, #tpu.memory_space<vmem>>, vector<16x128xbf16>
    %c0_34 = arith.constant 0 : index
    %c0_35 = arith.constant 0 : index
    %c0_36 = arith.constant 0 : index
    %32 = vector.load %arg4[%c0_34, %c0_35, %c0_36] : memref<3x128x128xbf16, #tpu.memory_space<vmem>>, vector<1x128x128xbf16>
    %33 = vector.shape_cast %32 : vector<1x128x128xbf16> to vector<128x128xbf16>
    %cst_37 = arith.constant dense<0.000000e+00> : vector<16x128xf32>
    %34 = tpu.matmul %31, %33, %cst_37 {dimension_numbers = #tpu.dot_dimension_numbers<[1], [0], [0], [1], [0, 0, 1, 1], [], []>} : vector<16x128xbf16>, vector<128x128xbf16>, vector<16x128xf32> -> vector<16x128xf32>
    %c1_38 = arith.constant 1 : index
    %c0_39 = arith.constant 0 : index
    %c0_40 = arith.constant 0 : index
    %35 = vector.load %arg4[%c1_38, %c0_39, %c0_40] : memref<3x128x128xbf16, #tpu.memory_space<vmem>>, vector<1x128x128xbf16>
    %36 = vector.shape_cast %35 : vector<1x128x128xbf16> to vector<128x128xbf16>
    %cst_41 = arith.constant dense<0.000000e+00> : vector<16x128xf32>
    %37 = tpu.matmul %29, %36, %cst_41 {dimension_numbers = #tpu.dot_dimension_numbers<[1], [0], [0], [1], [0, 0, 1, 1], [], []>} : vector<16x128xbf16>, vector<128x128xbf16>, vector<16x128xf32> -> vector<16x128xf32>
    %38 = arith.addf %34, %37 : vector<16x128xf32>
    %c3_42 = arith.constant 3 : index
    %c0_43 = arith.constant 0 : index
    %39 = vector.load %arg8[%c3_42, %c0_43] : memref<20x128xbf16, #tpu.memory_space<vmem>>, vector<16x128xbf16>
    %c2_44 = arith.constant 2 : index
    %c0_45 = arith.constant 0 : index
    %c0_46 = arith.constant 0 : index
    %40 = vector.load %arg4[%c2_44, %c0_45, %c0_46] : memref<3x128x128xbf16, #tpu.memory_space<vmem>>, vector<1x128x128xbf16>
    %41 = vector.shape_cast %40 : vector<1x128x128xbf16> to vector<128x128xbf16>
    %cst_47 = arith.constant dense<0.000000e+00> : vector<16x128xf32>
    %42 = tpu.matmul %39, %41, %cst_47 {dimension_numbers = #tpu.dot_dimension_numbers<[1], [0], [0], [1], [0, 0, 1, 1], [], []>} : vector<16x128xbf16>, vector<128x128xbf16>, vector<16x128xf32> -> vector<16x128xf32>
    %43 = arith.addf %38, %42 : vector<16x128xf32>
    %c0_48 = arith.constant 0 : index
    %c0_49 = arith.constant 0 : index
    %44 = vector.load %arg5[%c0_48, %c0_49] : memref<1x128xf32, #tpu.memory_space<vmem>>, vector<1x128xf32>
    %45 = vector.broadcast %44 : vector<1x128xf32> to vector<16x128xf32>
    %46 = arith.addf %43, %45 : vector<16x128xf32>
    %cst_50 = arith.constant 0.000000e+00 : f32
    %47 = vector.broadcast %cst_50 : f32 to vector<16x128xf32>
    %48 = arith.maximumf %46, %47 : vector<16x128xf32>
    %c0_51 = arith.constant 0 : index
    %c0_52 = arith.constant 0 : index
    %c0_53 = arith.constant 0 : index
    %49 = vector.load %arg6[%c0_51, %c0_52, %c0_53] : memref<1x16x128xf32, #tpu.memory_space<vmem>>, vector<1x16x128xf32>
    %50 = vector.shape_cast %49 : vector<1x16x128xf32> to vector<16x128xf32>
    %51 = vector.shape_cast %48 : vector<16x128xf32> to vector<1x16x128xf32>
    tpu.vector_store %arg6[%c0_51, %c0_52, %c0_53], %51 {strides = array<i32>} : memref<1x16x128xf32, #tpu.memory_space<vmem>>, vector<1x16x128xf32>,
    return
  }
  func.func @transform_0(%arg0: i32) -> (i32, i32, i32) {
    %c0_i32 = arith.constant 0 : i32
    %c0_i32_0 = arith.constant 0 : i32
    %c0_i32_1 = arith.constant 0 : i32
    return %arg0, %c0_i32, %c0_i32_0 : i32, i32, i32
  }
  func.func @transform_1(%arg0: i32) -> (i32, i32, i32) {
    %c0_i32 = arith.constant 0 : i32
    %c0_i32_0 = arith.constant 0 : i32
    %c0_i32_1 = arith.constant 0 : i32
    %c0_i32_2 = arith.constant 0 : i32
    return %c0_i32, %c0_i32_0, %c0_i32_1 : i32, i32, i32
  }
  func.func @transform_2(%arg0: i32) -> (i32, i32) {
    %c0_i32 = arith.constant 0 : i32
    %c0_i32_0 = arith.constant 0 : i32
    %c0_i32_1 = arith.constant 0 : i32
    return %c0_i32, %c0_i32_0 : i32, i32
  }
  func.func @transform_3(%arg0: i32) -> (i32, i32, i32) {
    %c0_i32 = arith.constant 0 : i32
    %c0_i32_0 = arith.constant 0 : i32
    %c0_i32_1 = arith.constant 0 : i32
    %c0_i32_2 = arith.constant 0 : i32
    return %c0_i32, %c0_i32_0, %c0_i32_1 : i32, i32, i32
  }
  func.func @transform_4(%arg0: i32) -> (i32, i32) {
    %c0_i32 = arith.constant 0 : i32
    %c0_i32_0 = arith.constant 0 : i32
    %c0_i32_1 = arith.constant 0 : i32
    return %c0_i32, %c0_i32_0 : i32, i32
  }
  func.func @transform_5(%arg0: i32) -> (i32, i32, i32) {
    %c0_i32 = arith.constant 0 : i32
    %c0_i32_0 = arith.constant 0 : i32
    %c0_i32_1 = arith.constant 0 : i32
    return %arg0, %c0_i32, %c0_i32_0 : i32, i32, i32
  }
}

</mosaic_0001>

<bundles_post_ra>
// kernel: conv_block_forward.1
= control target key start
LH: loop header
LB: loop body
LE: loop exit
PB: predicated region body
PF: predicated region fallthrough
CT: control target
= control target key end

     0   :  { %s1366_s18 = smov 0   ;;  %s1568_s0 = inlined_call_operand.vmem [shape: bf16[2,16,64], index: 0, kind: input, shape index: {}]   ;;  %s1569_s1 = inlined_call_operand.vmem [shape: bf16[3,64,128], index: 1, kind: input, shape index: {}]   ;;  %s1570_s2 = inlined_call_operand.vmem [shape: f32[1,128], index: 2, kind: input, shape index: {}]   ;;  %s1571_s3 = inlined_call_operand.vmem [shape: bf16[3,128,128], index: 3, kind: input, shape index: {}]   ;;  %s1572_s4 = inlined_call_operand.vmem [shape: f32[1,128], index: 4, kind: input, shape index: {}]   ;;  %s1573_s5 = inlined_call_operand.vmem [shape: f32[2,16,128], index: 5, kind: output, shape index: {}]  }
   0x1 LB: > { %s1019_s19 = sadd.s32 4294967295, %s1332_s18   ;;  %p1023_p0 = scmp.ge.s32.totalorder %s1332_s18, 1  ;;  %s1332_s18 = sphi %s1366_s18, %s15_s18  }
   0x2   : > { %p187_p1 = scmp.lt.s32.totalorder %s1332_s18, 3 }
   0x4   : > { %p188_p2 = pnand %p1023_p0, %p187_p1 }
   0x5   : > { %v1282_v0 = vld [vmem:[%s1569_s1 + $0x20] sm:$0xff] (!%p188_p2)   ;;  %v1334_v1 = vmov (!%p188_p2), 0.0   ;;  %v1283_v2 = vld [vmem:[%s1569_s1 + $0x28] sm:$0xff] (!%p188_p2)   ;;  %vm1335_vm0 = vmmov (!%p188_p2), 0   ;;  %p215_p3 = scmp.lt.s32.totalorder (!%p188_p2), %s1019_s19, 1  ;;  %vm226_vm1 = vcmask (!%p188_p2), 516096  }
   0x6   : > { %191 = sbr.rel (%p188_p2) target bundleno = 516 (0x204), region = 40  ;;  %1176 = vmatprep.subr.bf16.mxu0 (!%p188_p2), %v1334_v1  ;;  %1188 = vmatprep.subr.bf16.mxu1 (!%p188_p2), %v1334_v1  ;;  %v1285_v3 = vld [vmem:[%s1569_s1] sm:$0xff] (!%p188_p2)   ;;  %vm227_vm2 = vsmask.f32 (!%p188_p2), 7938  ;;  %v1284_v5 = vld [vmem:[%s1569_s1 + $0x30] sm:$0xff] (!%p188_p2)   ;;  %vm238_vm4 = vcmask (!%p188_p2), 1040384  }
   0x7   : > { %1177 = vmatpush3.bf16.msra.mxu0 (!%p188_p2), %v1282_v0  ;;  %1184 = vmatprep.mubr.msk.bf16.mxu0 (!%p188_p2), %vm1335_vm0, %v1334_v1  ;;  %v229_v4 = vld [vmem:[#allocation2] sm:$0x1] (!%p188_p2)  ;;  %vm228_vm3 = vmand (!%p188_p2), %vm226_vm1, %vm227_vm2  ;;  %v240_v6 = vld [vmem:[#allocation3] sm:$0x1] (!%p188_p2)  ;;  %vm252_vm5 = vcmask (!%p188_p2), 1044484   ;;  %vm262_vm7 = vcmask (!%p188_p2), 519169  }
   0x8   : > { %1178 = vmatprep.subr.bf16.mxu0 (!%p188_p2), %v1334_v1  ;;  %1196 = vmatprep.mubr.msk.bf16.mxu1 (!%p188_p2), %vm1335_vm0, %v1334_v1  ;;  %v230_v7 = vsel (!%p188_p2), %vm228_vm3, 0, %v229_v4  ;;  %vm239_vm6 = vmand (!%p188_p2), %vm238_vm4, %vm227_vm2  ;;  %v1286_v8 = vld [vmem:[%s1569_s1 + $0x38] sm:$0xff] (!%p188_p2)   ;;  %v1287_v15 = vld [vmem:[%s1569_s1 + $0x8] sm:$0xff] (!%p188_p2)   ;;  %vm264_vm9 = vcmask (!%p188_p2), 519168   ;;  %vm232_vm10 = vcmask (!%p188_p2), 517121   ;;  %vm315_vm11 = vcmask (!%p188_p2), 523264  }
   0x9   : > { %1189 = vmatpush3.bf16.msra.mxu1 (!%p188_p2), %v1285_v3  ;;  %231 = vst [vmem:[#allocation2] sm:$0x1] (!%p188_p2), %v230_v7  ;;  %v241_v9 = vsel (!%p188_p2), %vm239_vm6, 0, %v240_v6  ;;  %vm1405_vm8 = vmor (!%p188_p2), %vm238_vm4, %vm252_vm5  ;;  %v1289_v18 = vld [vmem:[%s1569_s1 + $0x10] sm:$0xff] (!%p188_p2)   ;;  %v1288_v21 = vld [vmem:[%s1569_s1 + $0x40] sm:$0xff] (!%p188_p2)  }
   0xa   : > { %1190 = vmatprep.subr.bf16.mxu1 (!%p188_p2), %v1334_v1  ;;  %242 = vst [vmem:[#allocation3] sm:$0x1] (!%p188_p2), %v241_v9  ;;  %v1291_v22 = vld [vmem:[%s1569_s1 + $0x18] sm:$0xff] (!%p188_p2)   ;;  %vm233_vm12 = vsmask.f32 (!%p188_p2), 1280  ;;  %v1290_v25 = vld [vmem:[%s1569_s1 + $0x48] sm:$0xff] (!%p188_p2)  }
   0xb   : > { %1179 = vmatpush3.bf16.msra.mxu0 (!%p188_p2), %v1283_v2  ;;  %v235_v23 = vld [vmem:[#allocation2 + $0x8] sm:$0x2] (!%p188_p2)  ;;  %vm234_vm13 = vmand (!%p188_p2), %vm232_vm10, %vm233_vm12  ;;  %vm368_vm14 = vsmask.f32 (!%p188_p2), 7424  ;;  %v1292_v30 = vld [vmem:[%s1569_s1 + $0x50] sm:$0xff] (!%p188_p2)  }
   0xc   : > { %1180 = vmatprep.subr.bf16.mxu0 (!%p188_p2), %v1334_v1  ;;  %v236_v24 = vsel (!%p188_p2), %vm234_vm13, 0, %v235_v23  ;;  %vm466_vm15 = vsmask.f32 (!%p188_p2), 6400  ;;  %v1296_v37 = vld [vmem:[%s1569_s1 + $0x58] sm:$0xff] (!%p188_p2)   ;;  %v1298_v46 = vld [vmem:[%s1571_s3 + $0x40] sm:$0xff] (!%p188_p2)   ;;  %v1299_v52 = vld [vmem:[%s1571_s3 + $0x48] sm:$0xff] (!%p188_p2)  }
   0xd   : > { %s1577_s19 = smov (!%p215_p3, %s1019_s19), 1  ;;  %1191 = vmatpush3.bf16.msra.mxu1 %v1287_v15  ;;  %237 = vst [vmem:[#allocation2 + $0x8] sm:$0x2] %v236_v24  ;;  %v1300_v55 = vld [vmem:[%s1571_s3 + $0x50] sm:$0xff]   ;;  %v1301_v56 = vld [vmem:[%s1571_s3 + $0x58] sm:$0xff]   ;;  %v1302_v57 = vld [vmem:[%s1571_s3 + $0x60] sm:$0xff]  }
   0xe   : > { %s1130_s28 = sshll.u32 %s1577_s19, 3  ;;  %1192 = vmatprep.subr.bf16.mxu1 %v1334_v1  ;;  %v1303_v58 = vld [vmem:[%s1571_s3 + $0x68] sm:$0xff]   ;;  %v1304_v59 = vld [vmem:[%s1571_s3] sm:$0xff]   ;;  %v1305_v60 = vld [vmem:[%s1571_s3 + $0x70] sm:$0xff]  }
   0xf   : > { %s219_s6 = scalar_lea.vmem %s1568_s0, %s1130_s28  ;;  %1181 = vmatpush3.bf16.msra.mxu0 %v1284_v5  ;;  %v1306_v61 = vld [vmem:[%s1571_s3 + $0x8] sm:$0xff]   ;;  %v1307_v62 = vld [vmem:[%s1571_s3 + $0x78] sm:$0xff]   ;;  %v1308_v63 = vld [vmem:[%s1571_s3 + $0x10] sm:$0xff]  }
  0x10   : > { %v248_v10 = vld [vmem:[%s219_s6] sm:$0xf]  ;;  %v249_v11 = vld [vmem:[%s219_s6 + $0x4] sm:$0xf]  ;;  %1182 = vmatprep.subr.bf16.mxu0 %v1334_v1  ;;  %v1310_v0 = vld [vmem:[%s1571_s3 + $0x18] sm:$0xff]   ;;  %s1131_s6 = sshll.u32 %s1577_s19, 4 }
  0x11   : > { %v254_v13 = vrot.slane %v248_v10, 7  ;;  %v256_v14 = vrot.slane %v249_v11, 7  ;;  %v1036_v20 = vcombine.low %v248_v10, %v249_v11  ;;  %1193 = vmatpush3.bf16.msra.mxu1 %v1289_v18  ;;  %v245_v2 = vld [vmem:[#allocation3 + $0x8] sm:$0x2]  ;;  %v1312_v3 = vld [vmem:[%s1571_s3 + $0x20] sm:$0xff]   ;;  %v1314_v5 = vld [vmem:[%s1571_s3 + $0x28] sm:$0xff]   ;;  %s224_s9 = scalar_lea.vmem %s1573_s5, %s1131_s6 }
  0x12   : > { %1194 = vmatprep.subr.bf16.mxu1 %v1334_v1  ;;  %v1316_v6 = vld [vmem:[%s1571_s3 + $0x30] sm:$0xff]   ;;  %v1318_v7 = vld [vmem:[%s1571_s3 + $0x38] sm:$0xff]  }
  0x13   : > { %v255_v16 = vrot.slane %v254_v13, 4  ;;  %v258_v17 = vrot.slane %v256_v14, 4  ;;  %263 = vst.msk [vmem:[#allocation2] sm:$0xe] %vm262_vm7, %v254_v13  ;;  %1183 = vmatpush3.bf16.msra.mxu0 %v1286_v8 }
  0x14   : > { %1200 = vmatprep.subr.bf16.mxu0 %v1334_v1 }
  0x15   : > { %v257_v19 = vsel %vm1405_vm8, %v255_v16, %v256_v14  ;;  %267 = vst.msk [vmem:[#allocation2 + $0x8] sm:$0x1] %vm226_vm1, %v258_v17  ;;  %1195 = vmatpush3.bf16.msra.mxu1 %v1291_v22  ;;  %vm243_vm1 = vcmask 1041409  }
  0x16   : > { %265 = vst.msk [vmem:[#allocation2 + $0x4] sm:$0xf] %vm264_vm9, %v257_v19  ;;  %1185 = vmatmul.mubr.msk.bf16.vlgmr.msra.gmra.mrb[0].mxu0 %vm315_vm11, %v1036_v20  ;;  %1212 = vmatprep.subr.bf16.mxu1 %v1334_v1  ;;  %vm244_vm2 = vmand %vm243_vm1, %vm233_vm12  ;;  %v1064_v20 = vld [vmem:[%s1570_s2] ss:$0 sm:$0xff] }
  0x17   : > { %1201 = vmatpush3.bf16.msra.mxu0 %v1288_v21  ;;  %1208 = vmatprep.mubr.msk.bf16.mxu0 %vm1335_vm0, %v1334_v1  ;;  %v246_v4 = vsel %vm244_vm2, 0, %v245_v2 }
  0x18   : > { %1202 = vmatprep.subr.bf16.mxu0 %v1334_v1  ;;  %247 = vst [vmem:[#allocation3 + $0x8] sm:$0x2] %v246_v4 }
  0x1a   : > { %v268_v26 = vld [vmem:[#allocation2] sm:$0xf] }
  0x1b   : > { %v449_v27 = vld [vmem:[#allocation2] sm:$0xe]  ;;  %1203 = vmatpush3.bf16.msra.mxu0 %v1290_v25 }
  0x1c   : > { %v1294_v28 = vld [vmem:[#allocation2 + $0x8] ss:$0 sps:$4 sm:$0x11]   ;;  %1204 = vmatprep.subr.bf16.mxu0 %v1334_v1 }
  0x1d   : > { %v269_v29 = vld [vmem:[#allocation2 + $0x4] sm:$0xf]  ;;  %v377_v32 = vshll.u32 %v1294_v28, 16  ;;  %v1297_v39 = vld [vmem:[#allocation2 + $0x8] ss:$0 sps:$4 sm:$0x33]  }
  0x1e   : > { %v1042_v31 = vcombine.low %v268_v26, %v269_v29  ;;  %v1057_v33 = vcombine.low %v449_v27, %v269_v29  ;;  %v476_v44 = vshrl.u32 %v1297_v39, 16  ;;  %v479_v45 = vshll.u32 %v1297_v39, 16 }
  0x1f   : > { %v379_v36 = vrot.slane %v377_v32, 1  ;;  %1205 = vmatpush3.bf16.msra.mxu0 %v1292_v30 }
  0x20   : > { %v370_v34 = vshrl.u32 %v1042_v31, 16  ;;  %v372_v35 = vshll.u32 %v1042_v31, 16  ;;  %v468_v38 = vshrl.u32 %v1057_v33, 16  ;;  %v471_v40 = vshll.u32 %v1057_v33, 16  ;;  %1206 = vmatprep.subr.bf16.mxu0 %v1334_v1  ;;  %v1309_v31 = vld [vmem:[%s1571_s3 + $0x80] sm:$0xff]  }
  0x21   : > { %v478_v49 = vrot.slane %v476_v44, 1  ;;  %v481_v50 = vrot.slane %v479_v45, 2  ;;  %v1317_v45 = vld [vmem:[%s1571_s3 + $0xa0] sm:$0xff]  }
  0x22   : > { %v374_v41 = vrot.slane %v372_v35, 1  ;;  %v470_v42 = vrot.slane %v468_v38, 1  ;;  %v473_v43 = vrot.slane %v471_v40, 2  ;;  %v1313_v40 = vld [vmem:[%s1571_s3 + $0x90] sm:$0xff]  }
  0x23   : > { %1207 = vmatpush3.bf16.msra.mxu0 %v1296_v37  ;;  %v482_v53 = vor.u32 %v481_v50, %v478_v49  ;;  %v1311_v37 = vld [vmem:[%s1571_s3 + $0x88] sm:$0xff]  }
  0x24   : > { %v375_v47 = vor.u32 %v374_v41, %v370_v34  ;;  %v474_v48 = vor.u32 %v473_v43, %v470_v42  ;;  %1232 = vmatprep.subr.bf16.mxu0 %v1334_v1  ;;  %v1315_v41 = vld [vmem:[%s1571_s3 + $0x98] sm:$0xff]  }
  0x26   : > { %v380_v51 = vsel %vm368_vm14, %v375_v47, %v379_v36  ;;  %v483_v54 = vsel %vm466_vm15, %v474_v48, %v482_v53 }
  0x27   : > { %1197 = vmatmul.mubr.msk.bf16.vlgmr.msra.gmra.mrb[0].mxu1 %vm315_vm11, %v380_v51  ;;  %1209 = vmatmul.mubr.msk.bf16.vlgmr.msra.gmra.mrb[4].mxu0 %vm315_vm11, %v483_v54 }
  0x28   : > { %1213 = vmatpush3.bf16.msra.mxu1 %v1298_v46  ;;  %1228 = vmatprep.mubr.msk.bf16.mxu1 %vm1335_vm0, %v1334_v1 }
  0x29   : > { %1214 = vmatprep.subr.bf16.mxu1 %v1334_v1  ;;  %1248 = vmatprep.mubr.msk.bf16.mxu0 %vm1335_vm0, %v1334_v1 }
  0x2a   : > { %1233 = vmatpush3.bf16.msra.mxu0 %v1304_v59 }
  0x2b   : > { %1234 = vmatprep.subr.bf16.mxu0 %v1334_v1 }
  0x2c   : > { %1215 = vmatpush3.bf16.msra.mxu1 %v1299_v52 }
  0x2d   : > { %1216 = vmatprep.subr.bf16.mxu1 %v1334_v1 }
  0x2e   : > { %1235 = vmatpush3.bf16.msra.mxu0 %v1306_v61  ;;  %v1322_v61 = vld [vmem:[%s1571_s3 + $0xb0] sm:$0xff]  }
  0x2f   : > { %1236 = vmatprep.subr.bf16.mxu0 %v1334_v1 }
  0x30   : > { %1217 = vmatpush3.bf16.msra.mxu1 %v1300_v55  ;;  %v1321_v55 = vld [vmem:[%s1571_s3 + $0xa8] sm:$0xff]  }
  0x31   : > { %1218 = vmatprep.subr.bf16.mxu1 %v1334_v1 }
  0x32   : > { %1237 = vmatpush3.bf16.msra.mxu0 %v1308_v63 }
  0x33   : > { %1238 = vmatprep.subr.bf16.mxu0 %v1334_v1 }
  0x34   : > { %1219 = vmatpush3.bf16.msra.mxu1 %v1301_v56 }
  0x35   : > { %1220 = vmatprep.subr.bf16.mxu1 %v1334_v1 }
  0x36   : > { %1239 = vmatpush3.bf16.msra.mxu0 %v1310_v0 }
  0x37   : > { %1240 = vmatprep.subr.bf16.mxu0 %v1334_v1 }
  0x38   : > { %1221 = vmatpush3.bf16.msra.mxu1 %v1302_v57 }
  0x39   : > { %1222 = vmatprep.subr.bf16.mxu1 %v1334_v1 }
  0x3a   : > { %1241 = vmatpush3.bf16.msra.mxu0 %v1312_v3  ;;  %v1323_v3 = vld [vmem:[%s1571_s3 + $0xb8] sm:$0xff]  }
  0x3b   : > { %1242 = vmatprep.subr.bf16.mxu0 %v1334_v1 }
  0x3c   : > { %1223 = vmatpush3.bf16.msra.mxu1 %v1303_v58 }
  0x3d   : > { %1224 = vmatprep.subr.bf16.mxu1 %v1334_v1 }
  0x3e   : > { %1243 = vmatpush3.bf16.msra.mxu0 %v1314_v5 }
  0x3f   : > { %1244 = vmatprep.subr.bf16.mxu0 %v1334_v1 }
  0x40   : > { %1225 = vmatpush3.bf16.msra.mxu1 %v1305_v60 }
  0x41   : > { %1226 = vmatprep.subr.bf16.mxu1 %v1334_v1 }
  0x42   : > { %1245 = vmatpush3.bf16.msra.mxu0 %v1316_v6 }
  0x43   : > { %1246 = vmatprep.subr.bf16.mxu0 %v1334_v1 }
  0x44   : > { %1227 = vmatpush3.bf16.msra.mxu1 %v1307_v62 }
  0x45   : > { %1252 = vmatprep.subr.bf16.mxu1 %v1334_v1 }
  0x46   : > { %1247 = vmatpush3.bf16.msra.mxu0 %v1318_v7 }
  0xe9   : > { %v353_v8 = vpop.f32.mrb[0].mxu0 }
  0xea   : > { %v1186_v9 = vpop.f32.mrb[1].mxu0 }
  0xeb   : > { %v356_v10 = vpop.f32.mrb[2].mxu0 }
  0xec   : > { %v1187_v11 = vpop.f32.mrb[3].mxu0 }
  0xfa   : > { %v442_v13 = vpop.f32.mrb[0].mxu1  ;;  %v545_v19 = vpop.f32.mrb[4].mxu0 }
  0xfb   : > { %v443_v14 = vadd.f32 %v442_v13, %v353_v8  ;;  %v1198_v15 = vpop.f32.mrb[1].mxu1  ;;  %v1210_v22 = vpop.f32.mrb[5].mxu0 }
  0xfc   : > { %v445_v16 = vpop.f32.mrb[2].mxu1  ;;  %v548_v23 = vpop.f32.mrb[6].mxu0 }
  0xfd   : > { %v446_v17 = vadd.f32 %v445_v16, %v356_v10  ;;  %v1199_v18 = vpop.f32.mrb[3].mxu1  ;;  %v552_v21 = vadd.f32 %v545_v19, %v443_v14  ;;  %v1211_v26 = vpop.f32.mrb[7].mxu0 }
  0xff   : > { %v561_v24 = vadd.f32 %v1064_v20, %v552_v21  ;;  %v553_v25 = vadd.f32 %v548_v23, %v446_v17 }
 0x101   : > { %v563_v27 = vmax.f32 %v561_v24, 0.0  ;;  %v562_v28 = vadd.f32 %v1064_v20, %v553_v25 }
 0x103   : > { %v1132_v29 = vpack.c.bf16 %v563_v27, %v563_v27  ;;  %v564_v30 = vmax.f32 %v562_v28, 0.0 }
 0x105   : > { %v571_v32 = vrot.slane %v1132_v29, 7  ;;  %v565_v33 = vpack.c.bf16 %v564_v30, %v563_v27  ;;  %v1133_v34 = vpack.c.bf16 %v564_v30, %v564_v30 }
 0x107   : > { %v572_v35 = vrot.slane %v571_v32, 4  ;;  %579 = vst [vmem:[#allocation3] sm:$0xe] %v571_v32  ;;  %v573_v36 = vrot.slane %v1133_v34, 7  ;;  %1229 = vmatmul.mubr.bf16.vlgmr.msra.gmra.mrb[4].mxu1 %v565_v33 }
 0x108   : > { %1253 = vmatpush3.bf16.msra.mxu1 %v1309_v31  ;;  %1268 = vmatprep.mubr.msk.bf16.mxu1 %vm1335_vm0, %v1334_v1 }
 0x109   : > { %v574_v38 = vsel %vm1405_vm8, %v572_v35, %v573_v36  ;;  %v575_v39 = vrot.slane %v573_v36, 4  ;;  %1254 = vmatprep.subr.bf16.mxu1 %v1334_v1 }
 0x10a   : > { %580 = vst [vmem:[#allocation3 + $0x4] sm:$0xf] %v574_v38 }
 0x10b   : > { %581 = vst [vmem:[#allocation3 + $0x8] sm:$0x1] %v575_v39 }
 0x10c   : > { %1255 = vmatpush3.bf16.msra.mxu1 %v1311_v37 }
 0x10d   : > { %1256 = vmatprep.subr.bf16.mxu1 %v1334_v1 }
 0x10e   : > { %v582_v12 = vld [vmem:[#allocation3] sm:$0xf] }
 0x10f   : > { %v817_v48 = vld [vmem:[#allocation3] sm:$0xe] }
 0x110   : > { %1257 = vmatpush3.bf16.msra.mxu1 %v1313_v40 }
 0x111   : > { %1258 = vmatprep.subr.bf16.mxu1 %v1334_v1  ;;  %v583_v42 = vld [vmem:[#allocation3 + $0x4] sm:$0xf] }
 0x112   : > { %v1091_v43 = vcombine.low %v582_v12, %v583_v42  ;;  %v1320_v44 = vld [vmem:[#allocation3 + $0x8] ss:$0 sps:$4 sm:$0x11]   ;;  %v1117_v49 = vcombine.low %v817_v48, %v583_v42 }
 0x113   : > { %v723_v47 = vshll.u32 %v1320_v44, 16  ;;  %v1325_v52 = vld [vmem:[#allocation3 + $0x8] ss:$0 sps:$4 sm:$0x33]  }
 0x114   : > { %1259 = vmatpush3.bf16.msra.mxu1 %v1315_v41  ;;  %v718_v46 = vshll.u32 %v1091_v43, 16  ;;  %v716_v50 = vshrl.u32 %v1091_v43, 16  ;;  %v843_v56 = vshrl.u32 %v1117_v49, 16  ;;  %v846_v58 = vshll.u32 %v1117_v49, 16 }
 0x115   : > { %1260 = vmatprep.subr.bf16.mxu1 %v1334_v1  ;;  %v725_v54 = vrot.slane %v723_v47, 1  ;;  %v851_v59 = vshrl.u32 %v1325_v52, 16  ;;  %v854_v60 = vshll.u32 %v1325_v52, 16 }
 0x116   : > { %v720_v51 = vrot.slane %v718_v46, 1  ;;  %v845_v62 = vrot.slane %v843_v56, 1  ;;  %v848_v63 = vrot.slane %v846_v58, 2 }
 0x117   : > { %v853_v0 = vrot.slane %v851_v59, 1  ;;  %v856_v2 = vrot.slane %v854_v60, 2 }
 0x118   : > { %1261 = vmatpush3.bf16.msra.mxu1 %v1317_v45  ;;  %v721_v53 = vor.u32 %v720_v51, %v716_v50  ;;  %v849_v4 = vor.u32 %v848_v63, %v845_v62 }
 0x119   : > { %1262 = vmatprep.subr.bf16.mxu1 %v1334_v1  ;;  %v857_v5 = vor.u32 %v856_v2, %v853_v0 }
 0x11a   : > { %v726_v57 = vsel %vm368_vm14, %v721_v53, %v725_v54 }
 0x11b   : > { %1249 = vmatmul.mubr.bf16.vlgmr.msra.gmra.mrb[8].mxu0 %v726_v57  ;;  %v858_v6 = vsel %vm466_vm15, %v849_v4, %v857_v5 }
 0x11c   : > { %1263 = vmatpush3.bf16.msra.mxu1 %v1321_v55 }
 0x11d   : > { %1264 = vmatprep.subr.bf16.mxu1 %v1334_v1 }
 0x120   : > { %1265 = vmatpush3.bf16.msra.mxu1 %v1322_v61 }
 0x121   : > { %1266 = vmatprep.subr.bf16.mxu1 %v1334_v1  ;;  %v1127_v1 = vld [vmem:[%s1572_s4] ss:$0 sm:$0xff] }
 0x124   : > { %1267 = vmatpush3.bf16.msra.mxu1 %v1323_v3 }
 0x127   : > { %1269 = vmatmul.mubr.bf16.vlgmr.msra.gmra.mrb[8].mxu1 %v858_v6 }
 0x1da   : > { %v700_v7 = vpop.f32.mrb[4].mxu1 }
 0x1db   : > { %v1230_v8 = vpop.f32.mrb[5].mxu1 }
 0x1dc   : > { %v703_v9 = vpop.f32.mrb[6].mxu1 }
 0x1dd   : > { %v1231_v10 = vpop.f32.mrb[7].mxu1 }
 0x1ee   : > { %v810_v11 = vpop.f32.mrb[8].mxu0 }
 0x1ef   : > { %v811_v13 = vadd.f32 %v810_v11, %v700_v7  ;;  %v1250_v14 = vpop.f32.mrb[9].mxu0 }
 0x1f0   : > { %v813_v15 = vpop.f32.mrb[10].mxu0 }
 0x1f1   : > { %v814_v16 = vadd.f32 %v813_v15, %v703_v9  ;;  %v1251_v17 = vpop.f32.mrb[11].mxu0 }
 0x1fa   : > { %v942_v18 = vpop.f32.mrb[8].mxu1 }
 0x1fb   : > { %v949_v19 = vadd.f32 %v942_v18, %v811_v13  ;;  %v1270_v20 = vpop.f32.mrb[9].mxu1 }
 0x1fc   : > { %v945_v21 = vpop.f32.mrb[10].mxu1 }
 0x1fd   : > { %v958_v22 = vadd.f32 %v1127_v1, %v949_v19  ;;  %v950_v23 = vadd.f32 %v945_v21, %v814_v16  ;;  %v1271_v24 = vpop.f32.mrb[11].mxu1 }
 0x1ff   : > { %v960_v25 = vmax.f32 %v958_v22, 0.0  ;;  %v959_v26 = vadd.f32 %v1127_v1, %v950_v23 }
 0x201   : > { %962 = vst [vmem:[%s224_s9] sm:$0xff] %v960_v25  ;;  %v961_v27 = vmax.f32 %v959_v26, 0.0 }
 0x203   : > { %963 = vst [vmem:[%s224_s9 + $0x8] sm:$0xff] %v961_v27 }
 0x204 PF: > { %s15_s18 = sadd.s32 1, %s1332_s18  }
 0x205   : > { %p12_p4 = scmp.ge.s32.totalorder %s15_s18, 4  }
 0x207   :  { %14 = sbr.rel (!%p12_p4) target bundleno = 1 (0x1), region = 74 }

</bundles_post_ra>
